<compile_context>
chip_gen: v5e
topology: v5e:2x2
jax: 0.10.0
libtpu: 0.0.40
codegen_flags: <defaults>
</compile_context>

<pallas_src>
import jax
import jax.numpy as jnp
from jax.experimental import pallas as pl
from jax.experimental.pallas import tpu as pltpu

_LANE = 128
_MIB = 1024 * 1024


def _swish_kernel(x_ref, o_ref):
    x = x_ref[...]
    # Compute in f32 (required on v5e's VPU/EUP, harmless elsewhere); the whole
    # per-element chain hides under the HBM stream on all generations.
    xf = x.astype(jnp.float32)
    sig = pl.reciprocal(1.0 + jnp.exp(-xf), approx=True)
    o_ref[...] = (xf * sig).astype(o_ref.dtype)


def _round_up(v: int, m: int) -> int:
    return ((v + m - 1) // m) * m


def _sublane_granule(itemsize: int) -> int:
    # Native packed vreg tile rows: 8 (f32), 16 (bf16/f16), 32 (int8/fp8).
    return 8 * max(1, 4 // itemsize)


def _hw_budget():
    """(target_block_bytes, vmem_limit_bytes) for the current TPU generation."""
    try:
        vmem_cap = pltpu.get_tpu_info().vmem_capacity_bytes
    except Exception:
        vmem_cap = 64 * _MIB              # assume smallest (v7x-class) VMEM
    if vmem_cap >= 96 * _MIB:             # v5e / v6e class: 128 MiB physical
        return 16 * _MIB, 80 * _MIB       # 4 x block (dbl-buffered io) + slack
    return 8 * _MIB, 48 * _MIB            # v7x class: 64 MiB physical


def _pick_cols(n: int) -> int:
    """Widest lane-dense column count dividing n (prefer >= 8 sublane rows)."""
    for c in (2048, 1024, 512, 256, 128):
        if n % c == 0 and n >= 8 * c:
            return c
    for c in (2048, 1024, 512, 256, 128):
        if n % c == 0:
            return c
    return _LANE


def _choose_layout(n: int, itemsize: int, target_block_bytes: int):
    """Pick (cols, rows, tile_rows) for a 128-aligned flat tensor of n elems."""
    cols = _pick_cols(n)
    rows = n // cols
    g = _sublane_granule(itemsize)
    if rows <= g:
        # Tiny tensor: one block that exactly equals the array dims.
        return cols, rows, rows
    # Largest sublane-granular tile under the block-byte target.  No divisor
    # search: a partial last grid block is handled by Pallas write-masking.
    tile_rows = max(g, (target_block_bytes // (cols * itemsize)) // g * g)
    # Keep >= 2 grid steps for non-tiny inputs so both v7x TensorCores get work.
    tile_rows = min(tile_rows, _round_up(pl.cdiv(rows, 2), g))
    return cols, rows, tile_rows


def swish(x: jax.Array) -> jax.Array:
    """Elementwise Swish: x * sigmoid(x), for floating-point tensors of any shape."""
    orig_shape = x.shape
    orig_dtype = x.dtype
    n = x.size
    if n == 0:
        return x

    x_flat = jnp.reshape(x, (-1,))
    itemsize = jnp.dtype(orig_dtype).itemsize

    # Kernel handles the 128-aligned prefix; the (< 128 elem) tail is plain XLA.
    n_main = (n // _LANE) * _LANE
    n_tail = n - n_main

    if n_main == 0:
        # Tiny ragged tensor: not worth a kernel launch.
        xf = x.astype(jnp.float32)
        return (xf * jax.nn.sigmoid(xf)).astype(orig_dtype)

    target_block_bytes, vmem_limit_bytes = _hw_budget()
    cols, rows, tile_rows = _choose_layout(n_main, itemsize, target_block_bytes)

    x_main = x_flat if n_tail == 0 else x_flat[:n_main]
    x2d = jnp.reshape(x_main, (rows, cols))
    grid = (pl.cdiv(rows, tile_rows),)

    out2d = pl.pallas_call(
        _swish_kernel,
        out_shape=jax.ShapeDtypeStruct((rows, cols), orig_dtype),
        grid_spec=pltpu.PrefetchScalarGridSpec(
            num_scalar_prefetch=0,
            grid=grid,
            in_specs=[pl.BlockSpec((tile_rows, cols), lambda i: (i, 0))],
            out_specs=pl.BlockSpec((tile_rows, cols), lambda i: (i, 0)),
        ),
        compiler_params=pltpu.CompilerParams(
            dimension_semantics=("parallel",),
            vmem_limit_bytes=vmem_limit_bytes,
        ),
    )(x2d)

    out_main = jnp.reshape(out2d, (-1,))
    if n_tail == 0:
        return jnp.reshape(out_main, orig_shape)

    tail = x_flat[n_main:].astype(jnp.float32)
    tail_out = (tail * jax.nn.sigmoid(tail)).astype(orig_dtype)
    out_flat = jnp.concatenate([out_main, tail_out])
    return jnp.reshape(out_flat, orig_shape)


if __name__ == "__main__":
    key = jax.random.PRNGKey(0)
    # Activation-sized tensor consistent with the module's use in rlkit nets.
    x = jax.random.normal(key, (2, 4, 16, 16), dtype=jnp.float32)
    y = jax.block_until_ready(swish(x))
    y_ref = x * jax.nn.sigmoid(x)
    assert y.shape == x.shape and y.dtype == x.dtype
    # approx reciprocal => small *relative* error that scales with |ref|.
    assert jnp.allclose(y, y_ref, atol=1e-5, rtol=5e-3)

    # Ragged size: exercises the aligned-prefix kernel (with a masked partial
    # last grid block) plus the plain-XLA tail path.
    x2 = jax.random.normal(jax.random.PRNGKey(1), (5, 300), dtype=jnp.float32)
    y2 = jax.block_until_ready(swish(x2))
    assert jnp.allclose(y2, x2 * jax.nn.sigmoid(x2), atol=1e-5, rtol=5e-3)

    # Tiny ragged size (< 128 elements): pure-XLA fallback.
    x3 = jax.random.normal(jax.random.PRNGKey(2), (3, 5, 7), dtype=jnp.float32)
    y3 = jax.block_until_ready(swish(x3))
    assert jnp.allclose(y3, x3 * jax.nn.sigmoid(x3), atol=1e-5, rtol=5e-3)

    print("KERNEL_OK")
</pallas_src>

<mosaic_0001>
module attributes {stable_mosaic.version = 11 : i64} {
  func.func @_swish_kernel(%arg0: i32, %arg1: memref<8x256xf32, #tpu.memory_space<vmem>>, %arg2: memref<8x256xf32, #tpu.memory_space<vmem>>) attributes {dimension_semantics = [#tpu.dimension_semantics<parallel>], iteration_bounds = array<i64: 1>, scalar_prefetch = 0 : i64, scratch_operands = 0 : i64, tpu.core_type = #tpu.core_type<tc>, window_params = [{transform_indices = @transform_0, window_bounds = array<i64: 8, 256>}, {transform_indices = @transform_1, window_bounds = array<i64: 8, 256>}]} {
    %c0 = arith.constant 0 : index
    %c0_0 = arith.constant 0 : index
    %0 = vector.load %arg1[%c0, %c0_0] : memref<8x256xf32, #tpu.memory_space<vmem>>, vector<8x256xf32>
    %cst = arith.constant 0.000000e+00 : f32
    %1 = vector.broadcast %cst : f32 to vector<8x256xf32>
    %2 = arith.subf %1, %0 : vector<8x256xf32>
    %3 = math.exp %2 : vector<8x256xf32>
    %cst_1 = arith.constant 1.000000e+00 : f32
    %4 = vector.broadcast %cst_1 : f32 to vector<8x256xf32>
    %5 = arith.addf %4, %3 : vector<8x256xf32>
    %6 = tpu.reciprocal %5 {approx = true} : vector<8x256xf32> -> vector<8x256xf32>
    %7 = arith.mulf %0, %6 : vector<8x256xf32>
    %c0_2 = arith.constant 0 : index
    %c0_3 = arith.constant 0 : index
    %8 = vector.load %arg2[%c0_2, %c0_3] : memref<8x256xf32, #tpu.memory_space<vmem>>, vector<8x256xf32>
    tpu.vector_store %arg2[%c0_2, %c0_3], %7 {strides = array<i32>} : memref<8x256xf32, #tpu.memory_space<vmem>>, vector<8x256xf32>,
    return
  }
  func.func @transform_0(%arg0: i32) -> (i32, i32) {
    %c0_i32 = arith.constant 0 : i32
    %c0_i32_0 = arith.constant 0 : i32
    return %arg0, %c0_i32 : i32, i32
  }
  func.func @transform_1(%arg0: i32) -> (i32, i32) {
    %c0_i32 = arith.constant 0 : i32
    %c0_i32_0 = arith.constant 0 : i32
    return %arg0, %c0_i32 : i32, i32
  }
}

</mosaic_0001>

<bundles_post_ra>
// kernel: tpu_custom_call.1
= control target key start
LH: loop header
LB: loop body
LE: loop exit
PB: predicated region body
PF: predicated region fallthrough
CT: control target
= control target key end

     0   :  { %6 = vsyncpa [#allocation3], 0  ;;  %s136_s0 = inlined_call_operand.hbm [shape: f32[8,256], index: 0, kind: input, shape index: {}]   ;;  %s137_s1 = inlined_call_operand.hbm [shape: f32[8,256], index: 1, kind: output, shape index: {}]  }
   0x1   :  { %7 = vsyncpa [#allocation4], 0  ;;  %s13_s8 = sshll.u32 %s136_s0, 4  ;;  %s118_s9 = smov [#allocation2]   ;;  %s14_s8 = int_to_ptr.hbm [resolvable:$true] %s13_s8 }
   0x2   :  { %s15_s10 = sshll.u32 %s118_s9, 4  ;;  %s16_s10 = int_to_ptr.vmem [resolvable:$true] %s15_s10 }
   0x3   :  { %18 = dma.hbm_to_vmem [thread:$0]  %s14_s8, 256, %s16_s10, [#allocation3]  }
   0x4   :  { %114 = dma.done.wait [#allocation3], 256  }
   0x5   :  { %115 = vsyncadd [#allocation3], 4294967040  ;;  %v23_v0 = vld [vmem:[#allocation2] sm:$0xff]  ;;  %v24_v1 = vld [vmem:[#allocation2 + $0x8] sm:$0xff]  ;;  %s119_s0 = smov [#allocation5]   ;;  %s46_s14 = sshll.u32 %s137_s1, 4  ;;  %s47_s14 = int_to_ptr.hbm [resolvable:$true] %s46_s14 }
   0x6   :  { %v25_v2 = vsub.f32 0.0, %v23_v0  ;;  %v26_v3 = vsub.f32 0.0, %v24_v1  ;;  %s44_s11 = sshll.u32 %s119_s0, 4  ;;  %s45_s11 = int_to_ptr.vmem [resolvable:$true] %s44_s11 }
   0x8   :  { %v27_v4 = vmul.f32 1.442695, %v25_v2  ;;  %v29_v5 = vmul.f32 1.442695, %v26_v3 }
   0xa   :  { %58 = vpow2.f32 %v27_v4 }
   0xb   :  { %60 = vpow2.f32 %v29_v5 }
  0x10   :  { %v59_v6 = vpop.eup %58 }
  0x11   :  { %v61_v7 = vpop.eup %60  ;;  %v31_v8 = vadd.f32 1.0, %v59_v6 }
  0x12   :  { %v32_v9 = vadd.f32 1.0, %v61_v7 }
  0x13   :  { %62 = vrcp.f32 %v31_v8 }
  0x14   :  { %64 = vrcp.f32 %v32_v9 }
  0x19   :  { %v63_v10 = vpop.eup %62 }
  0x1a   :  { %v65_v11 = vpop.eup %64  ;;  %v35_v12 = vmul.f32 %v63_v10, %v23_v0 }
  0x1b   :  { %v36_v13 = vmul.f32 %v65_v11, %v24_v1 }
  0x1c   :  { %37 = vst [vmem:[#allocation5] sm:$0xff] %v35_v12 }
  0x1d   :  { %38 = vst [vmem:[#allocation5 + $0x8] sm:$0xff] %v36_v13 }
  0x1e   :  { %49 = dma.vmem_to_hbm [thread:$0]  %s45_s11, 256, %s47_s14, [#allocation4]  }
  0x1f   :  { %116 = dma.done.wait [#allocation4], 256  }
  0x20   :  { %117 = vsyncadd [#allocation4], 4294967040 }
  0x21   :  { %54 = vsyncpa [#allocation3], 1 }
  0x22   :  { %55 = vsyncpa [#allocation4], 1 }

</bundles_post_ra>
